<compile_context>
chip_gen: v6e
topology: v6e:2x2x1
jax: 0.10.0
libtpu: 0.0.40
codegen_flags: <defaults>
</compile_context>

<pallas_src>
import math
import jax
import jax.numpy as jnp
from jax.experimental import pallas as pl
from jax.experimental.pallas import tpu as pltpu

# ---------------- config (small, consistent with the module) ----------------
B, S, H = 2, 8, 32
NUM_HEADS, NUM_KV_HEADS = 4, 2
HEAD_DIM = H // NUM_HEADS            # 8
MLP_DIM = 64
BASE = 10000.0
EPS = 1e-6

BS = B * S                           # 16 tokens total
PROJ_W = 4 * H + NUM_HEADS * H       # 256 = q|k|q_rh|k_rh (128) + V' (128)
assert S & (S - 1) == 0, "S must be a power of two for the shift-based batch mask"
S_SHIFT = S.bit_length() - 1         # log2(S)
assert HEAD_DIM % 2 == 0


def bert_block_kernel(x_ref, cossin_ref, wslab_ref, wd_ref, out_ref):
    x = x_ref[...]                                   # (BS, H)  f32
    cosf = cossin_ref[:, :H]                         # (BS, H)  f32, per-head-tiled rotary cos
    sinf = cossin_ref[:, H:]                         # (BS, H)  f32, per-head-tiled rotary sin

    # ---- attention_norm (RMSNorm); the norm weight is folded into the projection slab ----
    var = jnp.mean(x * x, axis=-1, keepdims=True)
    xn = (x * jax.lax.rsqrt(var + EPS)).astype(jnp.bfloat16)

    # ---- fused projection: [q | k | rot_half(q) | rot_half(k) | V'(=V@Wo, all heads)] ----
    proj = jnp.dot(xn, wslab_ref[:, :PROJ_W],
                   preferred_element_type=jnp.float32)              # (BS, 256) f32, lane-dense
    q_lin = proj[:, 0 * H:1 * H]
    k_lin = proj[:, 1 * H:2 * H]
    q_rh = proj[:, 2 * H:3 * H]
    k_rh = proj[:, 3 * H:4 * H]
    vpo = proj[:, 4 * H:4 * H + NUM_HEADS * H].astype(jnp.bfloat16)  # (BS, NH*H) = (16, 128)

    # ---- RoPE as pure elementwise (rotate_half + 1/sqrt(hd) already folded into the weights) ----
    q = q_lin * cosf + q_rh * sinf                   # (BS, H) f32
    k = k_lin * cosf + k_rh * sinf
    k_bf = k.astype(jnp.bfloat16)

    # ---- batch block-diagonal mask built in-kernel (no DMA) ----
    row = jax.lax.broadcasted_iota(jnp.int32, (BS, BS), 0)
    col = jax.lax.broadcasted_iota(jnp.int32, (BS, BS), 1)
    same_batch = jnp.right_shift(row, S_SHIFT) == jnp.right_shift(col, S_SHIFT)

    # ---- per-head attention: lane select on q (no shuffle), 2-D dots only, head loop unrolled ----
    lane = jax.lax.broadcasted_iota(jnp.int32, (1, H), 1)
    neg_big = jnp.float32(-1e30)
    attn = jnp.zeros((BS, H), jnp.float32)
    for h in range(NUM_HEADS):
        hmask = (lane >= h * HEAD_DIM) & (lane < (h + 1) * HEAD_DIM)       # (1, H) bool
        qh = jnp.where(hmask, q, 0.0).astype(jnp.bfloat16)                 # other heads' lanes -> 0
        # s[i, j] = q_h[i] . k_h[j]  (masked lanes contribute 0)
        s = jax.lax.dot_general(qh, k_bf, (((1,), (1,)), ((), ())),
                                preferred_element_type=jnp.float32)        # (BS, BS)
        s = jnp.where(same_batch, s, neg_big)
        s = s - jnp.max(s, axis=-1, keepdims=True)
        p = jnp.exp(s)
        p = p * pl.reciprocal(jnp.sum(p, axis=-1, keepdims=True), approx=True)
        vh = vpo[:, h * H:(h + 1) * H]                                     # (BS, H), Wo folded in
        attn = attn + jnp.dot(p.astype(jnp.bfloat16), vh,
                              preferred_element_type=jnp.float32)          # (BS, H) f32

    h_res = x + attn

    # ---- MLP on the RAW input x (reference: out = h + mlp(x); mlp_norm is unused) ----
    gu = jnp.dot(x.astype(jnp.bfloat16), wslab_ref[:, PROJ_W:],
                 preferred_element_type=jnp.float32)                       # (BS, 2M) lane-dense 128
    g = gu[:, :MLP_DIM]
    u = gu[:, MLP_DIM:]
    sig = 1.0 / (1.0 + jnp.exp(-g))                                        # SiLU in f32
    m = (g * sig) * u                                                      # SwiGLU
    mlp = jnp.dot(m.astype(jnp.bfloat16), wd_ref[...],
                  preferred_element_type=jnp.float32)                      # (BS, H)

    out_ref[...] = (h_res + mlp).astype(out_ref.dtype)


def _rotate_half_matrix(head_dim):
    """R such that (q @ R) == rotate_half(q) per head (sign included)."""
    half = head_dim // 2
    r = jnp.zeros((head_dim, head_dim), jnp.float32)
    idx = jnp.arange(half)
    r = r.at[idx + half, idx].set(-1.0)   # out[d]      = -q[d+half]   for d < half
    r = r.at[idx, idx + half].set(1.0)    # out[d+half] = +q[d]
    return r


def make_bert_block(params):
    """Returns fwd(x, position_ids) -> (B, S, H)."""
    group = NUM_HEADS // NUM_KV_HEADS
    scale = 1.0 / math.sqrt(HEAD_DIM)

    # --- weight-side preprocessing (done once, closed over; all exact linear rewrites) ---
    r_blk = jnp.kron(jnp.eye(NUM_HEADS, dtype=jnp.float32), _rotate_half_matrix(HEAD_DIM))  # (H, H)

    def expand_kv(w):  # (H, NKV*hd) -> (H, NH*hd): share each kv head across its query-head group
        w3 = w.reshape(H, NUM_KV_HEADS, HEAD_DIM)
        return jnp.repeat(w3, group, axis=1).reshape(H, NUM_HEADS * HEAD_DIM)

    wq_s = params["wq"] * scale                      # fold 1/sqrt(hd) into the q projection
    wk_e = expand_kv(params["wk"])
    wv_e = expand_kv(params["wv"])
    wo = params["wo"]                                # (NH*hd, H)

    # Fold Wo into V: per head h, Wvo_h = Wv_h @ Wo[h*hd:(h+1)*hd, :]  ->  (H, NH*H) = (32, 128)
    wvo = jnp.concatenate(
        [wv_e[:, h * HEAD_DIM:(h + 1) * HEAD_DIM] @ wo[h * HEAD_DIM:(h + 1) * HEAD_DIM, :]
         for h in range(NUM_HEADS)], axis=1)

    w_attn = jnp.concatenate([wq_s, wk_e, wq_s @ r_blk, wk_e @ r_blk, wvo], axis=1)   # (H, 256)
    w_attn = params["attn_norm_w"].reshape(H, 1) * w_attn       # fold RMSNorm weight: diag(wn) @ W
    w_gu = jnp.concatenate([params["wg"], params["wu"]], axis=1)                      # (H, 128)
    w_slab = jnp.concatenate([w_attn, w_gu], axis=1).astype(jnp.bfloat16)             # (H, 384) bf16
    w_d = params["wd"].astype(jnp.bfloat16)                                           # (M, H)  bf16

    half = HEAD_DIM // 2
    inv_freq = 1.0 / (BASE ** (jnp.arange(half, dtype=jnp.float32) * 2.0 / HEAD_DIM))

    def fwd(x, position_ids):
        b, s, h = x.shape
        assert (b, s, h) == (B, S, H)
        bs = b * s
        x2d = x.reshape(bs, h)

        # rotary tables, tiled per head and packed into ONE (BS, 2H) operand (single small DMA)
        pos = position_ids.reshape(bs).astype(jnp.float32)
        ang = pos[:, None] * inv_freq[None, :]                   # (BS, half)
        emb = jnp.concatenate([ang, ang], axis=-1)               # (BS, hd)
        cos_t = jnp.tile(jnp.cos(emb), (1, NUM_HEADS))           # (BS, H)
        sin_t = jnp.tile(jnp.sin(emb), (1, NUM_HEADS))           # (BS, H)
        cossin = jnp.concatenate([cos_t, sin_t], axis=-1)        # (BS, 2H)

        vmem = pl.BlockSpec(memory_space=pltpu.MemorySpace.VMEM)
        out2d = pl.pallas_call(
            bert_block_kernel,
            out_shape=jax.ShapeDtypeStruct((bs, h), x.dtype),
            in_specs=[vmem] * 4,          # only 4 inputs: x, cos|sin, weight slab, down-proj
            out_specs=vmem,
        )(x2d, cossin, w_slab, w_d)
        return out2d.reshape(b, s, h)

    return fwd


def init_params(key):
    ks = jax.random.split(key, 7)

    def w(k, shape, scale=0.05):
        return jax.random.normal(k, shape, jnp.float32) * scale

    return {
        "attn_norm_w": jnp.ones((1, H), jnp.float32),
        "wq": w(ks[0], (H, NUM_HEADS * HEAD_DIM)),
        "wk": w(ks[1], (H, NUM_KV_HEADS * HEAD_DIM)),
        "wv": w(ks[2], (H, NUM_KV_HEADS * HEAD_DIM)),
        "wo": w(ks[3], (NUM_HEADS * HEAD_DIM, H)),
        "wg": w(ks[4], (H, MLP_DIM)),
        "wu": w(ks[5], (H, MLP_DIM)),
        "wd": w(ks[6], (MLP_DIM, H)),
    }


if __name__ == "__main__":
    key = jax.random.PRNGKey(0)
    k_param, k_x = jax.random.split(key)
    params = init_params(k_param)

    x = jax.random.normal(k_x, (B, S, H), jnp.float32)
    position_ids = jnp.broadcast_to(jnp.arange(S, dtype=jnp.int32), (B, S))

    fwd = jax.jit(make_bert_block(params))
    out = fwd(x, position_ids)
    jax.block_until_ready(out)
    assert out.shape == (B, S, H)
    assert bool(jnp.isfinite(out).all())
    print("KERNEL_OK")
</pallas_src>

<mosaic_0001>
module attributes {stable_mosaic.version = 11 : i64} {
  func.func @bert_block_kernel(%arg0: memref<16x32xf32, #tpu.memory_space<vmem>>, %arg1: memref<16x64xf32, #tpu.memory_space<vmem>>, %arg2: memref<32x384xbf16, #tpu.memory_space<vmem>>, %arg3: memref<64x32xbf16, #tpu.memory_space<vmem>>, %arg4: memref<16x32xf32, #tpu.memory_space<vmem>>) attributes {dimension_semantics = [], scalar_prefetch = 0 : i64, scratch_operands = 0 : i64, tpu.core_type = #tpu.core_type<tc>} {
    %c0 = arith.constant 0 : index
    %c0_0 = arith.constant 0 : index
    %0 = vector.load %arg0[%c0, %c0_0] : memref<16x32xf32, #tpu.memory_space<vmem>>, vector<16x32xf32>
    %c0_1 = arith.constant 0 : index
    %c0_2 = arith.constant 0 : index
    %1 = vector.load %arg1[%c0_1, %c0_2] : memref<16x64xf32, #tpu.memory_space<vmem>>, vector<16x32xf32>
    %c0_3 = arith.constant 0 : index
    %c32 = arith.constant 32 : index
    %2 = vector.load %arg1[%c0_3, %c32] : memref<16x64xf32, #tpu.memory_space<vmem>>, vector<16x32xf32>
    %3 = arith.mulf %0, %0 : vector<16x32xf32>
    %cst = arith.constant dense<0.000000e+00> : vector<16xf32>
    %4 = vector.multi_reduction <add>, %3, %cst [1] : vector<16x32xf32> to vector<16xf32>
    %5 = vector.shape_cast %4 : vector<16xf32> to vector<16x1xf32>
    %cst_4 = arith.constant 3.200000e+01 : f32
    %6 = vector.broadcast %cst_4 : f32 to vector<16x1xf32>
    %7 = arith.divf %5, %6 : vector<16x1xf32>
    %cst_5 = arith.constant 9.99999997E-7 : f32
    %8 = vector.broadcast %cst_5 : f32 to vector<16x1xf32>
    %9 = arith.addf %7, %8 : vector<16x1xf32>
    %10 = math.rsqrt %9 : vector<16x1xf32>
    %11 = vector.broadcast %10 : vector<16x1xf32> to vector<16x32xf32>
    %12 = arith.mulf %0, %11 : vector<16x32xf32>
    %13 = arith.truncf %12 : vector<16x32xf32> to vector<16x32xbf16>
    %c0_6 = arith.constant 0 : index
    %c0_7 = arith.constant 0 : index
    %14 = vector.load %arg2[%c0_6, %c0_7] : memref<32x384xbf16, #tpu.memory_space<vmem>>, vector<32x256xbf16>
    %cst_8 = arith.constant dense<0.000000e+00> : vector<16x256xf32>
    %15 = tpu.matmul %13, %14, %cst_8 {dimension_numbers = #tpu.dot_dimension_numbers<[1], [0], [0], [1], [0, 0, 1, 1], [], []>} : vector<16x32xbf16>, vector<32x256xbf16>, vector<16x256xf32> -> vector<16x256xf32>
    %16 = vector.extract_strided_slice %15 {offsets = [0, 0], sizes = [16, 32], strides = [1, 1]} : vector<16x256xf32> to vector<16x32xf32>
    %17 = vector.extract_strided_slice %15 {offsets = [0, 32], sizes = [16, 32], strides = [1, 1]} : vector<16x256xf32> to vector<16x32xf32>
    %18 = vector.extract_strided_slice %15 {offsets = [0, 64], sizes = [16, 32], strides = [1, 1]} : vector<16x256xf32> to vector<16x32xf32>
    %19 = vector.extract_strided_slice %15 {offsets = [0, 96], sizes = [16, 32], strides = [1, 1]} : vector<16x256xf32> to vector<16x32xf32>
    %20 = vector.extract_strided_slice %15 {offsets = [0, 128], sizes = [16, 128], strides = [1, 1]} : vector<16x256xf32> to vector<16x128xf32>
    %21 = arith.truncf %20 : vector<16x128xf32> to vector<16x128xbf16>
    %22 = arith.mulf %16, %1 : vector<16x32xf32>
    %23 = arith.mulf %18, %2 : vector<16x32xf32>
    %24 = arith.addf %22, %23 : vector<16x32xf32>
    %25 = arith.mulf %17, %1 : vector<16x32xf32>
    %26 = arith.mulf %19, %2 : vector<16x32xf32>
    %27 = arith.addf %25, %26 : vector<16x32xf32>
    %28 = arith.truncf %27 : vector<16x32xf32> to vector<16x32xbf16>
    %29 = tpu.iota {dimensions = array<i32: 0>} : vector<16x16xi32>
    %30 = tpu.iota {dimensions = array<i32: 1>} : vector<16x16xi32>
    %c3_i32 = arith.constant 3 : i32
    %31 = vector.broadcast %c3_i32 : i32 to vector<16x16xi32>
    %32 = arith.shrsi %29, %31 : vector<16x16xi32>
    %c3_i32_9 = arith.constant 3 : i32
    %33 = vector.broadcast %c3_i32_9 : i32 to vector<16x16xi32>
    %34 = arith.shrsi %30, %33 : vector<16x16xi32>
    %35 = arith.cmpi eq, %32, %34 : vector<16x16xi32>
    %36 = tpu.iota {dimensions = array<i32: 1>} : vector<1x32xi32>
    %cst_10 = arith.constant 0.000000e+00 : f32
    %37 = vector.broadcast %cst_10 : f32 to vector<16x32xf32>
    %c0_i32 = arith.constant 0 : i32
    %38 = vector.broadcast %c0_i32 : i32 to vector<1x32xi32>
    %39 = arith.cmpi sge, %36, %38 : vector<1x32xi32>
    %c8_i32 = arith.constant 8 : i32
    %40 = vector.broadcast %c8_i32 : i32 to vector<1x32xi32>
    %41 = arith.cmpi slt, %36, %40 : vector<1x32xi32>
    %42 = arith.andi %39, %41 : vector<1x32xi1>
    %cst_11 = arith.constant 0.000000e+00 : f32
    %43 = vector.shape_cast %42 : vector<1x32xi1> to vector<1x32xi1>
    %44 = vector.broadcast %43 : vector<1x32xi1> to vector<16x32xi1>
    %45 = vector.broadcast %cst_11 : f32 to vector<16x32xf32>
    %46 = arith.select %44, %24, %45 : vector<16x32xi1>, vector<16x32xf32>
    %47 = arith.truncf %46 : vector<16x32xf32> to vector<16x32xbf16>
    %cst_12 = arith.constant dense<0.000000e+00> : vector<16x16xf32>
    %48 = tpu.matmul %47, %28, %cst_12 {dimension_numbers = #tpu.dot_dimension_numbers<[1], [1], [0], [0], [0, 0, 1, 0], [], []>} : vector<16x32xbf16>, vector<16x32xbf16>, vector<16x16xf32> -> vector<16x16xf32>
    %cst_13 = arith.constant -1.000000e+30 : f32
    %49 = vector.broadcast %cst_13 : f32 to vector<16x16xf32>
    %50 = arith.select %35, %48, %49 : vector<16x16xi1>, vector<16x16xf32>
    %cst_14 = arith.constant dense<0xFF800000> : vector<16xf32>
    %51 = vector.multi_reduction <maximumf>, %50, %cst_14 [1] : vector<16x16xf32> to vector<16xf32>
    %52 = vector.shape_cast %51 : vector<16xf32> to vector<16x1xf32>
    %53 = vector.broadcast %52 : vector<16x1xf32> to vector<16x16xf32>
    %54 = arith.subf %50, %53 : vector<16x16xf32>
    %55 = math.exp %54 : vector<16x16xf32>
    %cst_15 = arith.constant dense<0.000000e+00> : vector<16xf32>
    %56 = vector.multi_reduction <add>, %55, %cst_15 [1] : vector<16x16xf32> to vector<16xf32>
    %57 = vector.shape_cast %56 : vector<16xf32> to vector<16x1xf32>
    %58 = tpu.reciprocal %57 {approx = true} : vector<16x1xf32> -> vector<16x1xf32>
    %59 = vector.broadcast %58 : vector<16x1xf32> to vector<16x16xf32>
    %60 = arith.mulf %55, %59 : vector<16x16xf32>
    %61 = vector.extract_strided_slice %21 {offsets = [0, 0], sizes = [16, 32], strides = [1, 1]} : vector<16x128xbf16> to vector<16x32xbf16>
    %62 = arith.truncf %60 : vector<16x16xf32> to vector<16x16xbf16>
    %cst_16 = arith.constant dense<0.000000e+00> : vector<16x32xf32>
    %63 = tpu.matmul %62, %61, %cst_16 {dimension_numbers = #tpu.dot_dimension_numbers<[1], [0], [0], [1], [0, 0, 1, 1], [], []>} : vector<16x16xbf16>, vector<16x32xbf16>, vector<16x32xf32> -> vector<16x32xf32>
    %64 = arith.addf %37, %63 : vector<16x32xf32>
    %c8_i32_17 = arith.constant 8 : i32
    %65 = vector.broadcast %c8_i32_17 : i32 to vector<1x32xi32>
    %66 = arith.cmpi sge, %36, %65 : vector<1x32xi32>
    %c16_i32 = arith.constant 16 : i32
    %67 = vector.broadcast %c16_i32 : i32 to vector<1x32xi32>
    %68 = arith.cmpi slt, %36, %67 : vector<1x32xi32>
    %69 = arith.andi %66, %68 : vector<1x32xi1>
    %cst_18 = arith.constant 0.000000e+00 : f32
    %70 = vector.shape_cast %69 : vector<1x32xi1> to vector<1x32xi1>
    %71 = vector.broadcast %70 : vector<1x32xi1> to vector<16x32xi1>
    %72 = vector.broadcast %cst_18 : f32 to vector<16x32xf32>
    %73 = arith.select %71, %24, %72 : vector<16x32xi1>, vector<16x32xf32>
    %74 = arith.truncf %73 : vector<16x32xf32> to vector<16x32xbf16>
    %cst_19 = arith.constant dense<0.000000e+00> : vector<16x16xf32>
    %75 = tpu.matmul %74, %28, %cst_19 {dimension_numbers = #tpu.dot_dimension_numbers<[1], [1], [0], [0], [0, 0, 1, 0], [], []>} : vector<16x32xbf16>, vector<16x32xbf16>, vector<16x16xf32> -> vector<16x16xf32>
    %cst_20 = arith.constant -1.000000e+30 : f32
    %76 = vector.broadcast %cst_20 : f32 to vector<16x16xf32>
    %77 = arith.select %35, %75, %76 : vector<16x16xi1>, vector<16x16xf32>
    %cst_21 = arith.constant dense<0xFF800000> : vector<16xf32>
    %78 = vector.multi_reduction <maximumf>, %77, %cst_21 [1] : vector<16x16xf32> to vector<16xf32>
    %79 = vector.shape_cast %78 : vector<16xf32> to vector<16x1xf32>
    %80 = vector.broadcast %79 : vector<16x1xf32> to vector<16x16xf32>
    %81 = arith.subf %77, %80 : vector<16x16xf32>
    %82 = math.exp %81 : vector<16x16xf32>
    %cst_22 = arith.constant dense<0.000000e+00> : vector<16xf32>
    %83 = vector.multi_reduction <add>, %82, %cst_22 [1] : vector<16x16xf32> to vector<16xf32>
    %84 = vector.shape_cast %83 : vector<16xf32> to vector<16x1xf32>
    %85 = tpu.reciprocal %84 {approx = true} : vector<16x1xf32> -> vector<16x1xf32>
    %86 = vector.broadcast %85 : vector<16x1xf32> to vector<16x16xf32>
    %87 = arith.mulf %82, %86 : vector<16x16xf32>
    %88 = vector.extract_strided_slice %21 {offsets = [0, 32], sizes = [16, 32], strides = [1, 1]} : vector<16x128xbf16> to vector<16x32xbf16>
    %89 = arith.truncf %87 : vector<16x16xf32> to vector<16x16xbf16>
    %cst_23 = arith.constant dense<0.000000e+00> : vector<16x32xf32>
    %90 = tpu.matmul %89, %88, %cst_23 {dimension_numbers = #tpu.dot_dimension_numbers<[1], [0], [0], [1], [0, 0, 1, 1], [], []>} : vector<16x16xbf16>, vector<16x32xbf16>, vector<16x32xf32> -> vector<16x32xf32>
    %91 = arith.addf %64, %90 : vector<16x32xf32>
    %c16_i32_24 = arith.constant 16 : i32
    %92 = vector.broadcast %c16_i32_24 : i32 to vector<1x32xi32>
    %93 = arith.cmpi sge, %36, %92 : vector<1x32xi32>
    %c24_i32 = arith.constant 24 : i32
    %94 = vector.broadcast %c24_i32 : i32 to vector<1x32xi32>
    %95 = arith.cmpi slt, %36, %94 : vector<1x32xi32>
    %96 = arith.andi %93, %95 : vector<1x32xi1>
    %cst_25 = arith.constant 0.000000e+00 : f32
    %97 = vector.shape_cast %96 : vector<1x32xi1> to vector<1x32xi1>
    %98 = vector.broadcast %97 : vector<1x32xi1> to vector<16x32xi1>
    %99 = vector.broadcast %cst_25 : f32 to vector<16x32xf32>
    %100 = arith.select %98, %24, %99 : vector<16x32xi1>, vector<16x32xf32>
    %101 = arith.truncf %100 : vector<16x32xf32> to vector<16x32xbf16>
    %cst_26 = arith.constant dense<0.000000e+00> : vector<16x16xf32>
    %102 = tpu.matmul %101, %28, %cst_26 {dimension_numbers = #tpu.dot_dimension_numbers<[1], [1], [0], [0], [0, 0, 1, 0], [], []>} : vector<16x32xbf16>, vector<16x32xbf16>, vector<16x16xf32> -> vector<16x16xf32>
    %cst_27 = arith.constant -1.000000e+30 : f32
    %103 = vector.broadcast %cst_27 : f32 to vector<16x16xf32>
    %104 = arith.select %35, %102, %103 : vector<16x16xi1>, vector<16x16xf32>
    %cst_28 = arith.constant dense<0xFF800000> : vector<16xf32>
    %105 = vector.multi_reduction <maximumf>, %104, %cst_28 [1] : vector<16x16xf32> to vector<16xf32>
    %106 = vector.shape_cast %105 : vector<16xf32> to vector<16x1xf32>
    %107 = vector.broadcast %106 : vector<16x1xf32> to vector<16x16xf32>
    %108 = arith.subf %104, %107 : vector<16x16xf32>
    %109 = math.exp %108 : vector<16x16xf32>
    %cst_29 = arith.constant dense<0.000000e+00> : vector<16xf32>
    %110 = vector.multi_reduction <add>, %109, %cst_29 [1] : vector<16x16xf32> to vector<16xf32>
    %111 = vector.shape_cast %110 : vector<16xf32> to vector<16x1xf32>
    %112 = tpu.reciprocal %111 {approx = true} : vector<16x1xf32> -> vector<16x1xf32>
    %113 = vector.broadcast %112 : vector<16x1xf32> to vector<16x16xf32>
    %114 = arith.mulf %109, %113 : vector<16x16xf32>
    %115 = vector.extract_strided_slice %21 {offsets = [0, 64], sizes = [16, 32], strides = [1, 1]} : vector<16x128xbf16> to vector<16x32xbf16>
    %116 = arith.truncf %114 : vector<16x16xf32> to vector<16x16xbf16>
    %cst_30 = arith.constant dense<0.000000e+00> : vector<16x32xf32>
    %117 = tpu.matmul %116, %115, %cst_30 {dimension_numbers = #tpu.dot_dimension_numbers<[1], [0], [0], [1], [0, 0, 1, 1], [], []>} : vector<16x16xbf16>, vector<16x32xbf16>, vector<16x32xf32> -> vector<16x32xf32>
    %118 = arith.addf %91, %117 : vector<16x32xf32>
    %c24_i32_31 = arith.constant 24 : i32
    %119 = vector.broadcast %c24_i32_31 : i32 to vector<1x32xi32>
    %120 = arith.cmpi sge, %36, %119 : vector<1x32xi32>
    %c32_i32 = arith.constant 32 : i32
    %121 = vector.broadcast %c32_i32 : i32 to vector<1x32xi32>
    %122 = arith.cmpi slt, %36, %121 : vector<1x32xi32>
    %123 = arith.andi %120, %122 : vector<1x32xi1>
    %cst_32 = arith.constant 0.000000e+00 : f32
    %124 = vector.shape_cast %123 : vector<1x32xi1> to vector<1x32xi1>
    %125 = vector.broadcast %124 : vector<1x32xi1> to vector<16x32xi1>
    %126 = vector.broadcast %cst_32 : f32 to vector<16x32xf32>
    %127 = arith.select %125, %24, %126 : vector<16x32xi1>, vector<16x32xf32>
    %128 = arith.truncf %127 : vector<16x32xf32> to vector<16x32xbf16>
    %cst_33 = arith.constant dense<0.000000e+00> : vector<16x16xf32>
    %129 = tpu.matmul %128, %28, %cst_33 {dimension_numbers = #tpu.dot_dimension_numbers<[1], [1], [0], [0], [0, 0, 1, 0], [], []>} : vector<16x32xbf16>, vector<16x32xbf16>, vector<16x16xf32> -> vector<16x16xf32>
    %cst_34 = arith.constant -1.000000e+30 : f32
    %130 = vector.broadcast %cst_34 : f32 to vector<16x16xf32>
    %131 = arith.select %35, %129, %130 : vector<16x16xi1>, vector<16x16xf32>
    %cst_35 = arith.constant dense<0xFF800000> : vector<16xf32>
    %132 = vector.multi_reduction <maximumf>, %131, %cst_35 [1] : vector<16x16xf32> to vector<16xf32>
    %133 = vector.shape_cast %132 : vector<16xf32> to vector<16x1xf32>
    %134 = vector.broadcast %133 : vector<16x1xf32> to vector<16x16xf32>
    %135 = arith.subf %131, %134 : vector<16x16xf32>
    %136 = math.exp %135 : vector<16x16xf32>
    %cst_36 = arith.constant dense<0.000000e+00> : vector<16xf32>
    %137 = vector.multi_reduction <add>, %136, %cst_36 [1] : vector<16x16xf32> to vector<16xf32>
    %138 = vector.shape_cast %137 : vector<16xf32> to vector<16x1xf32>
    %139 = tpu.reciprocal %138 {approx = true} : vector<16x1xf32> -> vector<16x1xf32>
    %140 = vector.broadcast %139 : vector<16x1xf32> to vector<16x16xf32>
    %141 = arith.mulf %136, %140 : vector<16x16xf32>
    %142 = vector.extract_strided_slice %21 {offsets = [0, 96], sizes = [16, 32], strides = [1, 1]} : vector<16x128xbf16> to vector<16x32xbf16>
    %143 = arith.truncf %141 : vector<16x16xf32> to vector<16x16xbf16>
    %cst_37 = arith.constant dense<0.000000e+00> : vector<16x32xf32>
    %144 = tpu.matmul %143, %142, %cst_37 {dimension_numbers = #tpu.dot_dimension_numbers<[1], [0], [0], [1], [0, 0, 1, 1], [], []>} : vector<16x16xbf16>, vector<16x32xbf16>, vector<16x32xf32> -> vector<16x32xf32>
    %145 = arith.addf %118, %144 : vector<16x32xf32>
    %146 = arith.addf %0, %145 : vector<16x32xf32>
    %147 = arith.truncf %0 : vector<16x32xf32> to vector<16x32xbf16>
    %c0_38 = arith.constant 0 : index
    %c256 = arith.constant 256 : index
    %148 = vector.load %arg2[%c0_38, %c256] : memref<32x384xbf16, #tpu.memory_space<vmem>>, vector<32x128xbf16>
    %cst_39 = arith.constant dense<0.000000e+00> : vector<16x128xf32>
    %149 = tpu.matmul %147, %148, %cst_39 {dimension_numbers = #tpu.dot_dimension_numbers<[1], [0], [0], [1], [0, 0, 1, 1], [], []>} : vector<16x32xbf16>, vector<32x128xbf16>, vector<16x128xf32> -> vector<16x128xf32>
    %150 = vector.extract_strided_slice %149 {offsets = [0, 0], sizes = [16, 64], strides = [1, 1]} : vector<16x128xf32> to vector<16x64xf32>
    %151 = vector.extract_strided_slice %149 {offsets = [0, 64], sizes = [16, 64], strides = [1, 1]} : vector<16x128xf32> to vector<16x64xf32>
    %cst_40 = arith.constant 0.000000e+00 : f32
    %152 = vector.broadcast %cst_40 : f32 to vector<16x64xf32>
    %153 = arith.subf %152, %150 : vector<16x64xf32>
    %154 = math.exp %153 : vector<16x64xf32>
    %cst_41 = arith.constant 1.000000e+00 : f32
    %155 = vector.broadcast %cst_41 : f32 to vector<16x64xf32>
    %156 = arith.addf %155, %154 : vector<16x64xf32>
    %cst_42 = arith.constant 1.000000e+00 : f32
    %157 = vector.broadcast %cst_42 : f32 to vector<16x64xf32>
    %158 = arith.divf %157, %156 : vector<16x64xf32>
    %159 = arith.mulf %150, %158 : vector<16x64xf32>
    %160 = arith.mulf %159, %151 : vector<16x64xf32>
    %161 = arith.truncf %160 : vector<16x64xf32> to vector<16x64xbf16>
    %c0_43 = arith.constant 0 : index
    %c0_44 = arith.constant 0 : index
    %162 = vector.load %arg3[%c0_43, %c0_44] : memref<64x32xbf16, #tpu.memory_space<vmem>>, vector<64x32xbf16>
    %cst_45 = arith.constant dense<0.000000e+00> : vector<16x32xf32>
    %163 = tpu.matmul %161, %162, %cst_45 {dimension_numbers = #tpu.dot_dimension_numbers<[1], [0], [0], [1], [0, 0, 1, 1], [], []>} : vector<16x64xbf16>, vector<64x32xbf16>, vector<16x32xf32> -> vector<16x32xf32>
    %164 = arith.addf %146, %163 : vector<16x32xf32>
    %c0_46 = arith.constant 0 : index
    %c0_47 = arith.constant 0 : index
    %165 = vector.load %arg4[%c0_46, %c0_47] : memref<16x32xf32, #tpu.memory_space<vmem>>, vector<16x32xf32>
    tpu.vector_store %arg4[%c0_46, %c0_47], %164 {strides = array<i32>} : memref<16x32xf32, #tpu.memory_space<vmem>>, vector<16x32xf32>,
    return
  }
}

</mosaic_0001>

<bundles_post_ra>
// kernel: fwd.1
= control target key start
LH: loop header
LB: loop body
LE: loop exit
PB: predicated region body
PF: predicated region fallthrough
CT: control target
= control target key end

     0   :  { %vm25_vm0 = vcmask 261120   ;;  %s1313_s0 = inlined_call_operand.vmem [shape: f32[16,32], index: 0, kind: input, shape index: {}]   ;;  %s1314_s1 = inlined_call_operand.vmem [shape: f32[16,64], index: 1, kind: input, shape index: {}]   ;;  %s1315_s2 = inlined_call_operand.vmem [shape: bf16[32,384], index: 2, kind: input, shape index: {}]   ;;  %s1316_s3 = inlined_call_operand.vmem [shape: bf16[64,32], index: 3, kind: input, shape index: {}]   ;;  %s1317_s4 = inlined_call_operand.hbm [shape: f32[16,32], index: 4, kind: output, shape index: {}]  }
   0x1   :  { %v1091_v0 = vld [vmem:[%s1313_s0] sm:$0xff]  ;;  %v1096_v1 = vld [vmem:[%s1313_s0 + $0x8] sm:$0xff] }
   0x2   :  { %v23_v2 = vmul.f32 %v1091_v0, %v1091_v0  ;;  %v24_v3 = vmul.f32 %v1096_v1, %v1096_v1 }
   0x4   :  { %v26_v4 = vsel %vm25_vm0, %v23_v2, 0.0  ;;  %v29_v5 = vsel %vm25_vm0, %v24_v3, 0.0 }
   0x5   :  { %27 = vadd.xlane.f32.xlu0 %v26_v4 }
   0x6   :  { %9 = vsyncpa [#allocation3], 0  ;;  %v976_v6 = vld [vmem:[%s1315_s2 + $0x1c] ss:$12 sps:$4 sm:$0xff]   ;;  %v978_v7 = vld [vmem:[%s1315_s2 + $0x18] ss:$12 sps:$4 sm:$0xff]   ;;  %v154_v41 = vlaneseq }
   0x7   :  { %v979_v8 = vld [vmem:[%s1315_s2 + $0x4] ss:$12 sps:$4 sm:$0xff]   ;;  %81 = vmatprep.subr.bf16.mxu1 %v976_v6  ;;  %v1054_v9 = vmov 0   ;;  %v981_v10 = vld [vmem:[%s1315_s2] ss:$12 sps:$4 sm:$0xff]   ;;  %s1055_s28 = smov 64  }
   0x8   :  { %101 = vmatprep.mubr.bf16.mxu1 %v1054_v9  ;;  %82 = vmatpush1.bf16.msra.mxu1 %v978_v7  ;;  %v21_v11 = vld [vmem:[%s1314_s1] sm:$0xff]  ;;  %s1056_s29 = smov 32   ;;  %v1124_v12 = vld [vmem:[%s1314_s1 + $0x8] sm:$0xff]  ;;  %v1057_v34 = vmov 0.0   ;;  %vm1058_vm1 = vmmov 0   ;;  %s1059_s1 = smov 96  }
   0x9   :  { %30 = vadd.xlane.f32.xlu0 %v29_v5  ;;  %83 = vmatprep.subr.bf16.mxu1 %v979_v8  ;;  %v158_v42 = vand.u32 127, %v154_v41  ;;  %v155_v6 = vshrl.u32 %v154_v41, 7  ;;  %vm224_vm13 = vcmask 130048   ;;  %vm789_vm15 = vcmask 523264  }
   0xa   :  { %135 = vrot.lane.b32.xlu1 %v21_v11, %s1055_s28  ;;  %905 = vmatprep.subr.bf16.mxu0 %v1057_v34 }
   0xb   :  { %907 = vmatprep.mubr.msk.bf16.mxu0 %vm1058_vm1, %v1057_v34  ;;  %vm417_vm2 = vcmp.ge.s32.totalorder %v158_v42, 16  ;;  %vm418_vm3 = vcmp.lt.s32.totalorder %v158_v42, 24  ;;  %vm543_vm4 = vcmp.ge.s32.totalorder %v158_v42, 24  ;;  %vm544_vm5 = vcmp.lt.s32.totalorder %v158_v42, 32 }
   0xc   :  { %84 = vmatpush1.bf16.msra.mxu1 %v981_v10  ;;  %vm248_vm6 = vcmp.ge.s32.totalorder %v158_v42, 8  ;;  %vm249_vm7 = vcmp.lt.s32.totalorder %v158_v42, 16  ;;  %vm1144_vm8 = vmand %vm417_vm2, %vm418_vm3  ;;  %vm165_vm10 = vcmp.lt.s32.totalorder %v158_v42, 8  ;;  %v159_v7 = vshra.s32 %v155_v6, 3 }
   0xd   :  { %899 = vmatprep.subr.bf16.mxu1 %v1057_v34  ;;  %vm1151_vm9 = vmand %vm543_vm4, %vm544_vm5  ;;  %v161_v8 = vshra.s32 %v158_v42, 3  ;;  %v156_v9 = vadd.s32 8, %v155_v6 }
   0xe   :  { %137 = vrot.lane.b32.xlu1 %v1124_v12, %s1055_s28  ;;  %vm1159_vm11 = vmand %vm248_vm6, %vm249_vm7 }
   0xf   :  { %vm1190_vm12 = vcmp.eq.s32.totalorder %v159_v7, %v161_v8 }
  0x12   :  { %119 = vrot.lane.b32.xlu1 %v1124_v12, %s1056_s29 }
  0x1f   :  { %117 = vrot.lane.b32.xlu0 %v21_v11, %s1056_s29 }
  0x7c   :  { %v136_v24 = vpop.permute.xlu1 %135 }
  0x80   :  { %v138_v28 = vpop.permute.xlu1 %137 }
  0x84   :  { %v120_v33 = vpop.permute.xlu1 %119 }
  0x8e   :  { %v28_v13 = vpop.xlane.xlu0 %27 }
  0x8f   :  { %v33_v14 = vmul.f32 0.03125, %v28_v13 }
  0x91   :  { %v35_v15 = vadd.f32 1e-06, %v33_v14 }
  0x92   :  { %v31_v16 = vpop.xlane.xlu0 %30 }
  0x93   :  { %v34_v17 = vmul.f32 0.03125, %v31_v16  ;;  %988 = vrsqrt.f32 %v35_v15 }
  0x95   :  { %v36_v18 = vadd.f32 1e-06, %v34_v17 }
  0x96   :  { %v118_v31 = vpop.permute.xlu0 %117 }
  0x97   :  { %990 = vrsqrt.f32 %v36_v18 }
  0xa0   :  { %v989_v19 = vpop.eup %988 }
  0xa1   :  { %v39_v21 = vmul.f32 %v989_v19, %v1091_v0 }
  0xa4   :  { %v991_v20 = vpop.eup %990 }
  0xa5   :  { %v40_v22 = vmul.f32 %v991_v20, %v1096_v1 }
  0xa7   :  { %v41_v23 = vpack.c.bf16 %v40_v22, %v39_v21 }
  0xa9   :  { %858 = vmatmul.mubr.msk.bf16.vlgmr.msra.gmra.mxu1 %vm25_vm0, %v41_v23 }
  0xaa   :  { %901 = vmatprep.mubr.msk.bf16.mxu1 %vm1058_vm1, %v1057_v34 }
 0x169   :  { %v103_v25 = vpop.f32.mrf.mxu1 }
 0x16a   :  { %v141_v26 = vmul.f32 %v136_v24, %v103_v25  ;;  %v123_v32 = vmul.f32 %v118_v31, %v103_v25  ;;  %v113_v44 = vmul.f32 %v103_v25, %v21_v11  ;;  %v160_v11 = vshra.s32 %v156_v9, 3 }
 0x16b   :  { %v105_v27 = vpop.f32.mrf.mxu1 }
 0x16c   :  { %145 = vrot.lane.b32.xlu1 %v141_v26, %s1055_s28  ;;  %vm1197_vm14 = vcmp.eq.s32.totalorder %v160_v11, %v161_v8 }
 0x16d   :  { %v107_v29 = vpop.f32.mrf.mxu1 }
 0x16e   :  { %v142_v30 = vmul.f32 %v138_v28, %v107_v29  ;;  %v124_v36 = vmul.f32 %v120_v33, %v107_v29  ;;  %v114_v50 = vmul.f32 %v107_v29, %v1124_v12 }
 0x16f   :  { %v109_v54 = vpop.f32.mrf.mxu1 }
 0x170   :  { %147 = vrot.lane.b32.xlu1 %v142_v30, %s1055_s28  ;;  %v1180_v5 = vpack.c.bf16 %v109_v54, %v105_v27 }
 0x174   :  { %127 = vrot.lane.b32.xlu1 %v123_v32, %s1055_s28 }
 0x1de   :  { %v146_v35 = vpop.permute.xlu1 %145 }
 0x1df   :  { %v151_v38 = vadd.f32 %v146_v35, %v123_v32 }
 0x1e2   :  { %v148_v37 = vpop.permute.xlu1 %147 }
 0x1e3   :  { %v152_v39 = vadd.f32 %v148_v37, %v124_v36 }
 0x1e5   :  { %v153_v40 = vpack.c.bf16 %v152_v39, %v151_v38 }
 0x1e6   :  { %v128_v43 = vpop.permute.xlu1 %127 }
 0x1e7   :  { %173 = vrot.lane.b32.xlu1 %v153_v40, %s1059_s1  ;;  %v133_v49 = vadd.f32 %v128_v43, %v113_v44 }
 0x1e9   :  { %v169_v55 = vsel %vm165_vm10, %v133_v49, 0.0  ;;  %v422_v56 = vsel %vm1144_vm8, %v133_v49, 0.0  ;;  %v548_v57 = vsel %vm1151_vm9, %v133_v49, 0.0  ;;  %v253_v58 = vsel %vm1159_vm11, %v133_v49, 0.0  ;;  %v982_v49 = vld [vmem:[%s1315_s2 + $0x20] ss:$12 sps:$4 sm:$0xff]  }
 0x1eb   :  { %129 = vrot.lane.b32.xlu1 %v124_v36, %s1055_s28 }
 0x259   :  { %v174_v45 = vpop.permute.xlu1 %173 }
 0x25a   :  { %v1149_v47 = vsel %vm25_vm0, %v174_v45, 0 }
 0x25b   :  { %900 = vmatpush3.bf16.xpose.msra.mxu1 %v1149_v47  ;;  %906 = vmatpush3.bf16.xpose.msra.mxu0 %v1149_v47 }
 0x25c   :  { %917 = vmatprep.subr.bf16.mxu0 %v1057_v34  ;;  %911 = vmatprep.subr.bf16.mxu1 %v1057_v34 }
 0x25d   :  { %v130_v52 = vpop.permute.xlu1 %129 }
 0x25e   :  { %v134_v53 = vadd.f32 %v130_v52, %v114_v50  ;;  %v983_v50 = vld [vmem:[%s1315_s2 + $0x8] ss:$12 sps:$4 sm:$0xff]  }
 0x260   :  { %v170_v59 = vsel %vm165_vm10, %v134_v53, 0.0  ;;  %v423_v60 = vsel %vm1144_vm8, %v134_v53, 0.0  ;;  %v549_v61 = vsel %vm1151_vm9, %v134_v53, 0.0  ;;  %v254_v62 = vsel %vm1159_vm11, %v134_v53, 0.0 }
 0x261   :  { %v171_v63 = vpack.c.bf16 %v170_v59, %v169_v55  ;;  %v1176_v2 = vpack.c.bf16 %v423_v60, %v422_v56  ;;  %v1178_v3 = vpack.c.bf16 %v549_v61, %v548_v57  ;;  %v255_v4 = vpack.c.bf16 %v254_v62, %v253_v58 }
 0x263   :  { %902 = vmatmul.mubr.msk.bf16.vlgmr.msra.gmra.mxu1 %vm25_vm0, %v171_v63  ;;  %908 = vmatmul.mubr.msk.bf16.vlgmr.msra.gmra.mxu0 %vm25_vm0, %v255_v4 }
 0x264   :  { %918 = vmatpush3.bf16.msra.mxu0 %v1180_v5  ;;  %913 = vmatprep.mubr.msk.bf16.mxu1 %vm1058_vm1, %v1057_v34 }
 0x265   :  { %919 = vmatprep.mubr.msk.bf16.mxu0 %vm1058_vm1, %v1057_v34  ;;  %929 = vmatprep.subr.bf16.mxu0 %v1057_v34 }
 0x323   :  { %v215_v12 = vpop.f32.mrf.mxu1  ;;  %v293_v13 = vpop.f32.mrf.mxu0 }
 0x324   :  { %v300_v14 = vsel %vm1190_vm12, %v293_v13, -1e+30  ;;  %v222_v37 = vsel %vm1190_vm12, %v215_v12, -1e+30 }
 0x325   :  { %v903_v15 = vpop.f32.mrf.mxu1  ;;  %v909_v16 = vpop.f32.mrf.mxu0  ;;  %v302_v17 = vsel %vm224_vm13, %v300_v14, -inf  ;;  %v225_v38 = vsel %vm224_vm13, %v222_v37, -inf }
 0x326   :  { %303 = vmax.xlane.f32.xlu0 %v302_v17 }
 0x327   :  { %v218_v19 = vpop.f32.mrf.mxu1  ;;  %v296_v20 = vpop.f32.mrf.mxu0 }
 0x328   :  { %v301_v21 = vsel %vm1197_vm14, %v296_v20, -1e+30  ;;  %v223_v39 = vsel %vm1197_vm14, %v218_v19, -1e+30 }
 0x329   :  { %v904_v22 = vpop.f32.mrf.mxu1  ;;  %v910_v23 = vpop.f32.mrf.mxu0  ;;  %v305_v24 = vsel %vm224_vm13, %v301_v21, -inf  ;;  %v228_v40 = vsel %vm224_vm13, %v223_v39, -inf }
 0x32a   :  { %306 = vmax.xlane.f32.xlu1 %v305_v24 }
 0x33b   :  { %326 = vrot.lane.b32.xlu1 %v1180_v5, %s1059_s1 }
 0x3af   :  { %v304_v25 = vpop.xlane.xlu0 %303 }
 0x3b0   :  { %v308_v26 = vsub.f32 %v300_v14, %v304_v25 }
 0x3b2   :  { %v310_v27 = vmul.f32 1.442695, %v308_v26 }
 0x3b3   :  { %v307_v28 = vpop.xlane.xlu1 %306 }
 0x3b4   :  { %992 = vpow2.f32 %v310_v27  ;;  %v309_v29 = vsub.f32 %v301_v21, %v307_v28 }
 0x3b6   :  { %v312_v30 = vmul.f32 1.442695, %v309_v29 }
 0x3b7   :  { %v327_v31 = vpop.permute.xlu1 %326 }
 0x3b8   :  { %994 = vpow2.f32 %v312_v30  ;;  %912 = vmatpush3.bf16.msra.mxu1 %v327_v31 }
 0x3b9   :  { %923 = vmatprep.subr.bf16.mxu1 %v1057_v34 }
 0x3c1   :  { %v993_v32 = vpop.eup %992 }
 0x3c2   :  { %v314_v33 = vsel %vm224_vm13, %v993_v32, 0.0 }
 0x3c3   :  { %315 = vadd.xlane.f32.xlu0 %v314_v33 }
 0x3c5   :  { %v995_v35 = vpop.eup %994 }
 0x3c6   :  { %v317_v36 = vsel %vm224_vm13, %v995_v35, 0.0 }
 0x3c7   :  { %318 = vadd.xlane.f32.xlu0 %v317_v36 }
 0x3cb   :  { %226 = vmax.xlane.f32.xlu0 %v225_v38 }
 0x3cf   :  { %229 = vmax.xlane.f32.xlu0 %v228_v40 }
 0x44c   :  { %v316_v41 = vpop.xlane.xlu0 %315 }
 0x44d   :  { %996 = vrcp.f32 %v316_v41 }
 0x450   :  { %v319_v42 = vpop.xlane.xlu0 %318 }
 0x451   :  { %998 = vrcp.f32 %v319_v42 }
 0x454   :  { %v227_v51 = vpop.xlane.xlu0 %226 }
 0x455   :  { %v231_v52 = vsub.f32 %v222_v37, %v227_v51 }
 0x457   :  { %v233_v55 = vmul.f32 1.442695, %v231_v52 }
 0x458   :  { %v230_v53 = vpop.xlane.xlu0 %229 }
 0x459   :  { %v232_v56 = vsub.f32 %v223_v39, %v230_v53  ;;  %1000 = vpow2.f32 %v233_v55 }
 0x45a   :  { %v997_v43 = vpop.eup %996 }
 0x45b   :  { %v322_v45 = vmul.f32 %v997_v43, %v993_v32  ;;  %v235_v59 = vmul.f32 1.442695, %v232_v56 }
 0x45d   :  { %1002 = vpow2.f32 %v235_v59 }
 0x45e   :  { %v999_v44 = vpop.eup %998 }
 0x45f   :  { %v323_v46 = vmul.f32 %v999_v44, %v995_v35 }
 0x461   :  { %v324_v48 = vpack.c.bf16 %v323_v46, %v322_v45 }
 0x463   :  { %914 = vmatmul.mubr.msk.bf16.vlgmr.msra.gmra.mxu1 %vm224_vm13, %v324_v48 }
 0x464   :  { %924 = vmatpush3.bf16.xpose.msra.mxu1 %v1149_v47  ;;  %925 = vmatprep.mubr.msk.bf16.mxu1 %vm1058_vm1, %v1057_v34 }
 0x465   :  { %935 = vmatprep.subr.bf16.mxu1 %v1057_v34 }
 0x466   :  { %v1001_v13 = vpop.eup %1000 }
 0x467   :  { %v237_v17 = vsel %vm224_vm13, %v1001_v13, 0.0 }
 0x46a   :  { %v1003_v20 = vpop.eup %1002 }
 0x46b   :  { %926 = vmatmul.mubr.msk.bf16.vlgmr.msra.gmra.mxu1 %vm25_vm0, %v1176_v2  ;;  %v240_v10 = vsel %vm224_vm13, %v1003_v20, 0.0 }
 0x46c   :  { %936 = vmatpush3.bf16.xpose.msra.mxu1 %v1149_v47  ;;  %937 = vmatprep.mubr.msk.bf16.mxu1 %vm1058_vm1, %v1057_v34  ;;  %v671_v47 = vpack.c.bf16 %v1096_v1, %v1091_v0 }
 0x46d   :  { %947 = vmatprep.subr.bf16.mxu1 %v1057_v34 }
 0x473   :  { %938 = vmatmul.mubr.msk.bf16.vlgmr.msra.gmra.mxu1 %vm25_vm0, %v1178_v3 }
 0x474   :  { %948 = vmatpush3.bf16.msra.mxu1 %v982_v49  ;;  %951 = vmatprep.mubr.msk.bf16.mxu1 %vm1058_vm1, %v1057_v34 }
 0x475   :  { %949 = vmatprep.subr.bf16.mxu1 %v1057_v34 }
 0x478   :  { %950 = vmatpush3.bf16.msra.mxu1 %v983_v50 }
 0x47b   :  { %952 = vmatmul.mubr.msk.bf16.vlgmr.msra.gmra.mxu1 %vm25_vm0, %v671_v47 }
 0x523   :  { %v1240_v54 = vpop.f32.mrf.mxu1 }
 0x525   :  { %v915_v57 = vpop.f32.mrf.mxu1 }
 0x527   :  { %v1242_v58 = vpop.f32.mrf.mxu1 }
 0x529   :  { %v916_v60 = vpop.f32.mrf.mxu1 }
 0x52b   :  { %v462_v61 = vpop.f32.mrf.mxu1 }
 0x52c   :  { %v469_v62 = vsel %vm1190_vm12, %v462_v61, -1e+30 }
 0x52d   :  { %v927_v63 = vpop.f32.mrf.mxu1  ;;  %v471_v2 = vsel %vm224_vm13, %v469_v62, -inf }
 0x52e   :  { %472 = vmax.xlane.f32.xlu0 %v471_v2 }
 0x52f   :  { %v465_v3 = vpop.f32.mrf.mxu1 }
 0x530   :  { %v470_v4 = vsel %vm1197_vm14, %v465_v3, -1e+30 }
 0x531   :  { %v928_v6 = vpop.f32.mrf.mxu1  ;;  %v474_v7 = vsel %vm224_vm13, %v470_v4, -inf }
 0x532   :  { %475 = vmax.xlane.f32.xlu0 %v474_v7 }
 0x533   :  { %v588_v8 = vpop.f32.mrf.mxu1 }
 0x534   :  { %v595_v9 = vsel %vm1190_vm12, %v588_v8, -1e+30 }
 0x535   :  { %v939_v11 = vpop.f32.mrf.mxu1  ;;  %v597_v12 = vsel %vm224_vm13, %v595_v9, -inf }
 0x536   :  { %598 = vmax.xlane.f32.xlu0 %v597_v12 }
 0x537   :  { %v591_v14 = vpop.f32.mrf.mxu1 }
 0x538   :  { %v596_v15 = vsel %vm1197_vm14, %v591_v14, -1e+30 }
 0x539   :  { %v940_v16 = vpop.f32.mrf.mxu1  ;;  %v600_v19 = vsel %vm224_vm13, %v596_v15, -inf }
 0x53a   :  { %238 = vadd.xlane.f32.xlu0 %v237_v17  ;;  %601 = vmax.xlane.f32.xlu1 %v600_v19  ;;  %v984_v16 = vld [vmem:[%s1316_s3 + $0x18] sm:$0xff]   ;;  %v985_v19 = vld [vmem:[%s1316_s3 + $0x10] sm:$0xff]  }
 0x53b   :  { %v1257_v21 = vpop.f32.mrf.mxu1 }
 0x53c   :  { %v732_v52 = vsub.f32 0.0, %v1257_v21 }
 0x53d   :  { %v953_v22 = vpop.f32.mrf.mxu1 }
 0x53e   :  { %241 = vadd.xlane.f32.xlu0 %v240_v10  ;;  %v734_v55 = vmul.f32 1.442695, %v732_v52  ;;  %v986_v22 = vld [vmem:[%s1316_s3 + $0x8] sm:$0xff]  }
 0x53f   :  { %v1260_v23 = vpop.f32.mrf.mxu1 }
 0x540   :  { %v733_v53 = vsub.f32 0.0, %v1260_v23 }
 0x541   :  { %v954_v24 = vpop.f32.mrf.mxu1 }
 0x542   :  { %v736_v56 = vmul.f32 1.442695, %v733_v53 }
 0x54b   :  { %620 = vrot.lane.b32.xlu1 %v1180_v5, %s1056_s29 }
 0x54f   :  { %750 = vrot.lane.b32.xlu1 %v1260_v23, %s1055_s28 }
 0x5b7   :  { %v473_v18 = vpop.xlane.xlu0 %472 }
 0x5b8   :  { %v477_v25 = vsub.f32 %v469_v62, %v473_v18 }
 0x5ba   :  { %v479_v26 = vmul.f32 1.442695, %v477_v25 }
 0x5bb   :  { %v476_v27 = vpop.xlane.xlu0 %475 }
 0x5bc   :  { %1004 = vpow2.f32 %v479_v26  ;;  %v478_v28 = vsub.f32 %v470_v4, %v476_v27  ;;  %v987_v27 = vld [vmem:[%s1316_s3] sm:$0xff]   ;;  %s1060_s3 = smov [#allocation2]  }
 0x5bd   :  { %s843_s17 = sshll.u32 %s1060_s3, 4  ;;  %s844_s17 = int_to_ptr.vmem [resolvable:$true] %s843_s17 }
 0x5be   :  { %v481_v29 = vmul.f32 1.442695, %v478_v28  ;;  %s1032_s18 = scalar_lea.vmem %s844_s17, 256  ;;  %p1037_p1 = scmp.lt.s32.totalorder %s844_s17, %s844_s17 }
 0x5bf   :  { %v599_v30 = vpop.xlane.xlu0 %598  ;;  %p1033_p0 = scmp.ne.s32.totalorder %s844_s17, %s1032_s18  ;;  %p1038_p2 = scmp.lt.s32.totalorder %s1032_s18, %s1032_s18 }
 0x5c0   :  { %1006 = vpow2.f32 %v481_v29  ;;  %v603_v31 = vsub.f32 %v595_v9, %v599_v30 }
 0x5c1   :  { %p1039_p3 = por %p1038_p2, %p1037_p1 }
 0x5c2   :  { %v605_v32 = vmul.f32 1.442695, %v603_v31 }
 0x5c3   :  { %v239_v33 = vpop.xlane.xlu0 %238  ;;  %v602_v35 = vpop.xlane.xlu1 %601  ;;  %p1040_p4 = pnand %p1039_p3, %p1033_p0 }
 0x5c4   :  { %1008 = vpow2.f32 %v605_v32  ;;  %v604_v36 = vsub.f32 %v596_v15, %v602_v35 }
 0x5c5   :  { %1010 = vrcp.f32 %v239_v33 }
 0x5c6   :  { %v607_v37 = vmul.f32 1.442695, %v604_v36 }
 0x5c7   :  { %v242_v38 = vpop.xlane.xlu0 %241  ;;  %v621_v11 = vpop.permute.xlu1 %620 }
 0x5c8   :  { %1012 = vpow2.f32 %v607_v37 }
 0x5c9   :  { %v1005_v39 = vpop.eup %1004  ;;  %1014 = vrcp.f32 %v242_v38 }
 0x5ca   :  { %v483_v40 = vsel %vm224_vm13, %v1005_v39, 0.0  ;;  %1016 = vpow2.f32 %v734_v55 }
 0x5cb   :  { %484 = vadd.xlane.f32.xlu0 %v483_v40  ;;  %1018 = vpow2.f32 %v736_v56  ;;  %v751_v26 = vpop.permute.xlu1 %750 }
 0x5cd   :  { %v1007_v41 = vpop.eup %1006 }
 0x5ce   :  { %v486_v42 = vsel %vm224_vm13, %v1007_v41, 0.0 }
 0x5cf   :  { %487 = vadd.xlane.f32.xlu0 %v486_v42 }
 0x5d1   :  { %v1009_v43 = vpop.eup %1008 }
 0x5d2   :  { %v609_v44 = vsel %vm224_vm13, %v1009_v43, 0.0  ;;  %v1011_v45 = vpop.eup %1010 }
 0x5d3   :  { %610 = vadd.xlane.f32.xlu0 %v609_v44  ;;  %v245_v50 = vmul.f32 %v1011_v45, %v1001_v13 }
 0x5d5   :  { %v1013_v46 = vpop.eup %1012 }
 0x5d6   :  { %v1015_v48 = vpop.eup %1014  ;;  %v612_v49 = vsel %vm224_vm13, %v1013_v46, 0.0 }
 0x5d7   :  { %613 = vadd.xlane.f32.xlu0 %v612_v49  ;;  %v246_v47 = vmul.f32 %v1015_v48, %v1003_v20 }
 0x5d9   :  { %v247_v51 = vpack.c.bf16 %v246_v47, %v245_v50 }
 0x5db   :  { %920 = vmatmul.mubr.msk.bf16.vlgmr.msra.gmra.mxu0 %vm224_vm13, %v247_v51 }
 0x5dc   :  { %931 = vmatprep.mubr.msk.bf16.mxu0 %vm1058_vm1, %v1057_v34 }
 0x5ed   :  { %494 = vrot.lane.b32.xlu0 %v1180_v5, %s1055_s28  ;;  %v1017_v5 = vpop.eup %1016 }
 0x5ee   :  { %v1019_v62 = vpop.eup %1018  ;;  %v738_v4 = vadd.f32 1.0, %v1017_v5 }
 0x5ef   :  { %v739_v6 = vadd.f32 1.0, %v1019_v62 }
 0x5f1   :  { %748 = vrot.lane.b32.xlu0 %v1257_v21, %s1055_s28 }
 0x654   :  { %v485_v57 = vpop.xlane.xlu0 %484 }
 0x655   :  { %1020 = vrcp.f32 %v485_v57 }
 0x658   :  { %v488_v59 = vpop.xlane.xlu0 %487 }
 0x659   :  { %1022 = vrcp.f32 %v488_v59 }
 0x65c   :  { %v611_v60 = vpop.xlane.xlu0 %610 }
 0x65d   :  { %1024 = vrcp.f32 %v611_v60 }
 0x660   :  { %v614_v61 = vpop.xlane.xlu0 %613 }
 0x661   :  { %1026 = vrcp.f32 %v614_v61 }
 0x662   :  { %v1021_v63 = vpop.eup %1020  ;;  %1028 = vrcp.f32 %v738_v4 }
 0x663   :  { %v491_v7 = vmul.f32 %v1021_v63, %v1005_v39  ;;  %1030 = vrcp.f32 %v739_v6 }
 0x664   :  { %v495_v2 = vpop.permute.xlu0 %494 }
 0x665   :  { %930 = vmatpush3.bf16.msra.mxu0 %v495_v2 }
 0x666   :  { %v1023_v3 = vpop.eup %1022  ;;  %941 = vmatprep.subr.bf16.mxu0 %v1057_v34 }
 0x667   :  { %v492_v8 = vmul.f32 %v1023_v3, %v1007_v41 }
 0x668   :  { %v749_v24 = vpop.permute.xlu0 %748 }
 0x669   :  { %v493_v9 = vpack.c.bf16 %v492_v8, %v491_v7 }
 0x66a   :  { %v1025_v12 = vpop.eup %1024 }
 0x66b   :  { %932 = vmatmul.mubr.msk.bf16.vlgmr.msra.gmra.mxu0 %vm224_vm13, %v493_v9  ;;  %v617_v14 = vmul.f32 %v1025_v12, %v1009_v43 }
 0x66c   :  { %942 = vmatpush3.bf16.msra.mxu0 %v621_v11  ;;  %943 = vmatprep.mubr.msk.bf16.mxu0 %vm1058_vm1, %v1057_v34 }
 0x66d   :  { %955 = vmatprep.subr.bf16.mxu0 %v1057_v34 }
 0x66e   :  { %v1027_v13 = vpop.eup %1026 }
 0x66f   :  { %v618_v15 = vmul.f32 %v1027_v13, %v1013_v46  ;;  %v1029_v20 = vpop.eup %1028 }
 0x670   :  { %v1031_v10 = vpop.eup %1030  ;;  %v744_v25 = vmul.f32 %v1029_v20, %v1257_v21 }
 0x671   :  { %v619_v17 = vpack.c.bf16 %v618_v15, %v617_v14  ;;  %v745_v18 = vmul.f32 %v1031_v10, %v1260_v23 }
 0x672   :  { %v754_v28 = vmul.f32 %v749_v24, %v744_v25 }
 0x673   :  { %944 = vmatmul.mubr.msk.bf16.vlgmr.msra.gmra.mxu0 %vm224_vm13, %v619_v17  ;;  %v755_v29 = vmul.f32 %v751_v26, %v745_v18 }
 0x674   :  { %956 = vmatpush3.bf16.msra.mxu0 %v984_v16  ;;  %963 = vmatprep.mubr.msk.bf16.mxu0 %vm1058_vm1, %v1057_v34 }
 0x675   :  { %957 = vmatprep.subr.bf16.mxu0 %v1057_v34  ;;  %v756_v30 = vpack.c.bf16 %v755_v29, %v754_v28 }
 0x678   :  { %958 = vmatpush3.bf16.msra.mxu0 %v985_v19 }
 0x679   :  { %959 = vmatprep.subr.bf16.mxu0 %v1057_v34 }
 0x67c   :  { %960 = vmatpush3.bf16.msra.mxu0 %v986_v22 }
 0x67d   :  { %961 = vmatprep.subr.bf16.mxu0 %v1057_v34 }
 0x680   :  { %962 = vmatpush3.bf16.msra.mxu0 %v987_v27 }
 0x683   :  { %964 = vmatmul.mubr.msk.bf16.vlgmr.msra.gmra.mxu0 %vm789_vm15, %v756_v30 }
 0x69b   :  { %v410_v31 = vpop.f32.mrf.mxu0 }
 0x69c   :  { %v411_v42 = vadd.f32 %v410_v31, %v1240_v54 }
 0x69d   :  { %v921_v32 = vpop.f32.mrf.mxu0 }
 0x69f   :  { %v413_v33 = vpop.f32.mrf.mxu0 }
 0x6a0   :  { %v414_v43 = vadd.f32 %v413_v33, %v1242_v58 }
 0x6a1   :  { %v922_v23 = vpop.f32.mrf.mxu0 }
 0x72b   :  { %v534_v35 = vpop.f32.mrf.mxu0 }
 0x72c   :  { %v541_v34 = vadd.f32 %v534_v35, %v411_v42 }
 0x72d   :  { %v933_v21 = vpop.f32.mrf.mxu0 }
 0x72f   :  { %v537_v36 = vpop.f32.mrf.mxu0 }
 0x730   :  { %v542_v45 = vadd.f32 %v537_v36, %v414_v43 }
 0x731   :  { %v934_v37 = vpop.f32.mrf.mxu0 }
 0x733   :  { %v660_v38 = vpop.f32.mrf.mxu0 }
 0x734   :  { %v667_v44 = vadd.f32 %v660_v38, %v541_v34 }
 0x735   :  { %v945_v39 = vpop.f32.mrf.mxu0 }
 0x736   :  { %v669_v48 = vadd.f32 %v667_v44, %v1091_v0 }
 0x737   :  { %v663_v40 = vpop.f32.mrf.mxu0 }
 0x738   :  { %v668_v46 = vadd.f32 %v663_v40, %v542_v45 }
 0x739   :  { %v946_v41 = vpop.f32.mrf.mxu0 }
 0x73a   :  { %v670_v51 = vadd.f32 %v668_v46, %v1096_v1 }
 0x743   :  { %v827_v49 = vpop.f32.mrf.mxu0 }
 0x744   :  { %v834_v50 = vadd.f32 %v827_v49, %v669_v48 }
 0x745   :  { %v965_v47 = vpop.f32.mrf.mxu0 }
 0x746   :  { %836 = vst.msk [vmem:[#allocation2] sm:$0xff] %vm25_vm0, %v834_v50 }
 0x747   :  { %v830_v52 = vpop.f32.mrf.mxu0 }
 0x748   :  { %v835_v54 = vadd.f32 %v830_v52, %v670_v51 }
 0x749   :  { %v966_v53 = vpop.f32.mrf.mxu0 }
 0x74a   :  { %837 = vst.msk [vmem:[#allocation2 + $0x8] sm:$0xff] %vm25_vm0, %v835_v54 }
 0x74b   :  { %1043 = shalt.err (!%p1040_p4)
}
 0x74c   :  { %s1061_s19 = smov 128   ;;  %s1062_s20 = smov 8  }
 0x74d   :  { %849 = dma.vmem_to_hbm [thread:$0]  %s844_s17, 256, %s1317_s4, [#allocation3], %s1061_s19, %s1061_s19, %s1062_s20  }
 0x74e   :  { %1052 = dma.done.wait [#allocation3], 256  }
 0x74f   :  { %1053 = vsyncadd [#allocation3], 4294967040 }
 0x750   :  { %853 = vsyncpa [#allocation3], 1 }

</bundles_post_ra>
